<compile_context>
chip_gen: v7x
topology: tpu7x:2x2x1
jax: 0.10.0
libtpu: 0.0.40
codegen_flags: <defaults>
</compile_context>

<pallas_src>
import jax
import jax.numpy as jnp
from jax.experimental import pallas as pl
from jax.experimental.pallas import tpu as pltpu


LEAKY_SLOPE = 0.01  # nn.LeakyReLU default negative_slope


def _leaky_relu(v):
    return jnp.where(v > 0, v, LEAKY_SLOPE * v)


def _round_up(n, m):
    return ((n + m - 1) // m) * m


def pinn_kernel(xT_ref, w0_ref, b0_ref, w1_ref, b1_ref, w2_ref, b2_ref,
                wo_ref, bo_ref, o_ref):
    """Forward pass for one batch tile; activations are (features, tile_n)."""
    x_t = xT_ref[...]                     # (d_in, tile_n), f32
    w0 = w0_ref[...]                      # (h0, d_in), normalization folded in
    d_in = x_t.shape[0]

    # Layer 0 on the VPU: K = d_in is tiny -> outer-product FMAs, no MXU pass.
    h = b0_ref[...] + w0[:, 0:1] * x_t[0:1, :]          # (h0, tile_n) f32
    for j in range(1, d_in):
        h = h + w0[:, j:j + 1] * x_t[j:j + 1, :]

    # Hidden layers on the MXU: (out, in) @ (in, tile_n), f32 accumulation.
    # Activations are cast to the matmul dtype at the producer (halves spill /
    # vld traffic feeding the MXU when hidden_dtype=bf16); bias + LeakyReLU
    # stay in f32 on the VPU.
    w1 = w1_ref[...]
    h = _leaky_relu(h).astype(w1.dtype)
    w2 = w2_ref[...]
    h = _leaky_relu(jnp.dot(w1, h, preferred_element_type=jnp.float32)
                    + b1_ref[...]).astype(w2.dtype)
    h = _leaky_relu(jnp.dot(w2, h, preferred_element_type=jnp.float32)
                    + b2_ref[...])                       # (h2, tile_n) f32

    # Output layer (hidden -> 1): broadcast multiply + sublane reduction gives
    # a lane-dense (1, tile_n) row -- no masked 1-lane stores, no M=1 MXU pass.
    psi = jnp.sum(h * wo_ref[...], axis=0, keepdims=True) + bo_ref[...]
    o_ref[...] = psi.astype(o_ref.dtype)


def pinn_forward(x, lb, ub, params, *, tile_n=4096, hidden_dtype=jnp.bfloat16):
    """PINN forward via pallas_call, tiling (and padding) the batch dimension.

    hidden_dtype: dtype of the 64x64 hidden weights and the matching matmul
    operand (accumulation is always f32).  bfloat16 is the right default on
    v6e/v7x (MXU-bound kernel); pass jnp.float32 on v5e or when bit-tight
    agreement with an f32 reference is required.
    """
    N, d_in = x.shape
    (w0, b0), (w1, b1), (w2, b2), (w3, b3) = params
    assert w3.shape[1] == 1, "kernel specializes the GPE scalar-psi output"
    # TODO(synk): pde_loss / get_ground_state need autograd (2nd derivatives
    # w.r.t. the inputs); only the forward pass is implemented as a kernel.

    f32 = jnp.float32
    lb = lb.reshape(-1).astype(f32)
    ub = ub.reshape(-1).astype(f32)
    inv = 1.0 / (ub - lb)   # NOTE: assumes ub != lb, same as the PyTorch module

    # Fold (x - lb) * inv into layer 0 at trace time (plain JAX, outside kernel).
    w0f = (w0.astype(f32) * inv[:, None]).T                       # (h0, d_in)
    b0f = (b0.reshape(-1).astype(f32)
           - (lb * inv) @ w0.astype(f32)).reshape(-1, 1)          # (h0, 1)

    w1T = w1.T.astype(hidden_dtype)                               # (h1, h0)
    b1c = b1.reshape(-1, 1).astype(f32)
    w2T = w2.T.astype(hidden_dtype)                               # (h2, h1)
    b2c = b2.reshape(-1, 1).astype(f32)
    w3c = w3.astype(f32).reshape(-1, 1)                           # (h2, 1)
    b3c = b3.astype(f32).reshape(1, 1)

    # Lane-dense batch tiles.  Clamp the requested tile to the (padded) batch,
    # and guarantee >= 2 grid steps whenever N allows it so the "parallel"
    # batch axis can be sharded across v7x's two TensorCores.
    tile_n = _round_up(max(128, tile_n), 128)
    if N > 128:
        tile_n = min(tile_n, _round_up(pl.cdiv(N, 2), 128))
    tile_n = min(tile_n, _round_up(N, 128))
    n_pad = _round_up(N, tile_n)
    num_tiles = n_pad // tile_n

    # Pad BEFORE the transpose so XLA fuses pad+transpose into one HBM copy.
    xT = jnp.pad(x.astype(f32), ((0, n_pad - N), (0, 0))).T       # (d_in, n_pad)

    def const_spec(a):
        # Grid-invariant parameter: constant block index every step, so Mosaic
        # does not re-issue its DMA across grid steps.
        return pl.BlockSpec(a.shape, lambda i: (0,) * a.ndim)

    out = pl.pallas_call(
        pinn_kernel,
        out_shape=jax.ShapeDtypeStruct((1, n_pad), f32),
        grid_spec=pltpu.PrefetchScalarGridSpec(
            num_scalar_prefetch=0,
            grid=(num_tiles,),
            in_specs=[
                pl.BlockSpec((d_in, tile_n), lambda i: (0, i)),   # xT
                const_spec(w0f), const_spec(b0f),
                const_spec(w1T), const_spec(b1c),
                const_spec(w2T), const_spec(b2c),
                const_spec(w3c), const_spec(b3c),
            ],
            out_specs=pl.BlockSpec((1, tile_n), lambda i: (0, i)),
        ),
        compiler_params=pltpu.CompilerParams(
            dimension_semantics=("parallel",)),
    )(xT, w0f, b0f, w1T, b1c, w2T, b2c, w3c, b3c)

    return out[0, :N].reshape(N, 1)


def init_params(key, layer_sizes):
    """Xavier-normal weights (as in PINN.init_weights) + small uniform biases."""
    params = []
    for i in range(len(layer_sizes) - 1):
        fan_in, fan_out = layer_sizes[i], layer_sizes[i + 1]
        key, kw, kb = jax.random.split(key, 3)
        std = (2.0 / (fan_in + fan_out)) ** 0.5
        # stored as (in, out); the wrapper transposes to the layout it needs
        w = std * jax.random.normal(kw, (fan_in, fan_out), dtype=jnp.float32)
        bound = 1.0 / (fan_in ** 0.5)
        b = jax.random.uniform(kb, (1, fan_out), dtype=jnp.float32,
                               minval=-bound, maxval=bound)
        params.append((w, b))
    return params


def pinn_reference(x, lb, ub, params):
    """Pure-JAX reference of the same forward pass (sanity check)."""
    lb2 = lb.reshape(1, -1)
    ub2 = ub.reshape(1, -1)
    h = (x - lb2) / (ub2 - lb2)
    n_layers = len(params)
    for i, (w, b) in enumerate(params):
        h = h @ w + b
        if i < n_layers - 1:
            h = jnp.where(h > 0, h, LEAKY_SLOPE * h)
    return h


if __name__ == "__main__":
    layer_sizes = [2, 64, 64, 64, 1]   # 2D GPE: inputs are (x, y) coordinates
    lb = jnp.array([-1.0, -1.0], dtype=jnp.float32)
    ub = jnp.array([1.0, 1.0], dtype=jnp.float32)

    key = jax.random.PRNGKey(0)
    kp, k1, k2 = jax.random.split(key, 3)
    params = init_params(kp, layer_sizes)

    # Small demo batch: clamps to two 128-lane tiles (exercises the >=2-tile
    # guarantee for v7x megacore sharding).  bf16 hidden matmuls -> looser tol.
    x1 = jax.random.uniform(k1, (256, 2), dtype=jnp.float32,
                            minval=-1.0, maxval=1.0)
    ref1 = pinn_reference(x1, lb, ub, params)

    out1_bf16 = jax.block_until_ready(pinn_forward(x1, lb, ub, params))
    assert out1_bf16.shape == (256, 1)
    assert jnp.allclose(out1_bf16, ref1, atol=5e-2, rtol=5e-2), (
        float(jnp.max(jnp.abs(out1_bf16 - ref1))))

    # f32 hidden matmuls (v5e path) match the f32 reference tightly.
    out1_f32 = jax.block_until_ready(
        pinn_forward(x1, lb, ub, params, hidden_dtype=jnp.float32))
    assert jnp.allclose(out1_f32, ref1, atol=1e-5, rtol=1e-5), (
        float(jnp.max(jnp.abs(out1_f32 - ref1))))

    # Ragged batch exercising the multi-tile grid + padded-tail path.
    x2 = jax.random.uniform(k2, (300, 2), dtype=jnp.float32,
                            minval=-1.0, maxval=1.0)
    ref2 = pinn_reference(x2, lb, ub, params)

    out2_bf16 = jax.block_until_ready(pinn_forward(x2, lb, ub, params))
    assert out2_bf16.shape == (300, 1)
    assert jnp.allclose(out2_bf16, ref2, atol=5e-2, rtol=5e-2), (
        float(jnp.max(jnp.abs(out2_bf16 - ref2))))

    out2_f32 = jax.block_until_ready(
        pinn_forward(x2, lb, ub, params, hidden_dtype=jnp.float32,
                     tile_n=128))
    assert jnp.allclose(out2_f32, ref2, atol=1e-5, rtol=1e-5), (
        float(jnp.max(jnp.abs(out2_f32 - ref2))))

    print("KERNEL_OK")
</pallas_src>

<mosaic_0001>
module attributes {stable_mosaic.version = 11 : i64} {
  func.func @pinn_kernel(%arg0: i32, %arg1: memref<2x128xf32, #tpu.memory_space<vmem>>, %arg2: memref<64x2xf32, #tpu.memory_space<vmem>>, %arg3: memref<64x1xf32, #tpu.memory_space<vmem>>, %arg4: memref<64x64xbf16, #tpu.memory_space<vmem>>, %arg5: memref<64x1xf32, #tpu.memory_space<vmem>>, %arg6: memref<64x64xbf16, #tpu.memory_space<vmem>>, %arg7: memref<64x1xf32, #tpu.memory_space<vmem>>, %arg8: memref<64x1xf32, #tpu.memory_space<vmem>>, %arg9: memref<1x1xf32, #tpu.memory_space<vmem>>, %arg10: memref<1x128xf32, #tpu.memory_space<vmem>>) attributes {dimension_semantics = [#tpu.dimension_semantics<parallel>], iteration_bounds = array<i64: 2>, scalar_prefetch = 0 : i64, scratch_operands = 0 : i64, tpu.core_type = #tpu.core_type<tc>, window_params = [{transform_indices = @transform_0, window_bounds = array<i64: 2, 128>}, {pipeline_mode = #tpu.pipeline_mode<synchronous>, transform_indices = @transform_1, window_bounds = array<i64: 64, 2>}, {pipeline_mode = #tpu.pipeline_mode<synchronous>, transform_indices = @transform_2, window_bounds = array<i64: 64, 1>}, {pipeline_mode = #tpu.pipeline_mode<synchronous>, transform_indices = @transform_3, window_bounds = array<i64: 64, 64>}, {pipeline_mode = #tpu.pipeline_mode<synchronous>, transform_indices = @transform_4, window_bounds = array<i64: 64, 1>}, {pipeline_mode = #tpu.pipeline_mode<synchronous>, transform_indices = @transform_5, window_bounds = array<i64: 64, 64>}, {pipeline_mode = #tpu.pipeline_mode<synchronous>, transform_indices = @transform_6, window_bounds = array<i64: 64, 1>}, {pipeline_mode = #tpu.pipeline_mode<synchronous>, transform_indices = @transform_7, window_bounds = array<i64: 64, 1>}, {pipeline_mode = #tpu.pipeline_mode<synchronous>, transform_indices = @transform_8, window_bounds = array<i64: 1, 1>}, {transform_indices = @transform_9, window_bounds = array<i64: 1, 128>}]} {
    %c0 = arith.constant 0 : index
    %c0_0 = arith.constant 0 : index
    %0 = vector.load %arg1[%c0, %c0_0] : memref<2x128xf32, #tpu.memory_space<vmem>>, vector<2x128xf32>
    %c0_1 = arith.constant 0 : index
    %c0_2 = arith.constant 0 : index
    %1 = vector.load %arg2[%c0_1, %c0_2] : memref<64x2xf32, #tpu.memory_space<vmem>>, vector<64x2xf32>
    %c0_3 = arith.constant 0 : index
    %c0_4 = arith.constant 0 : index
    %2 = vector.load %arg3[%c0_3, %c0_4] : memref<64x1xf32, #tpu.memory_space<vmem>>, vector<64x1xf32>
    %3 = vector.extract_strided_slice %1 {offsets = [0, 0], sizes = [64, 1], strides = [1, 1]} : vector<64x2xf32> to vector<64x1xf32>
    %4 = vector.extract_strided_slice %0 {offsets = [0, 0], sizes = [1, 128], strides = [1, 1]} : vector<2x128xf32> to vector<1x128xf32>
    %5 = vector.broadcast %3 : vector<64x1xf32> to vector<64x128xf32>
    %6 = vector.broadcast %4 : vector<1x128xf32> to vector<64x128xf32>
    %7 = arith.mulf %5, %6 : vector<64x128xf32>
    %8 = vector.broadcast %2 : vector<64x1xf32> to vector<64x128xf32>
    %9 = arith.addf %8, %7 : vector<64x128xf32>
    %10 = vector.extract_strided_slice %1 {offsets = [0, 1], sizes = [64, 1], strides = [1, 1]} : vector<64x2xf32> to vector<64x1xf32>
    %11 = vector.extract_strided_slice %0 {offsets = [1, 0], sizes = [1, 128], strides = [1, 1]} : vector<2x128xf32> to vector<1x128xf32>
    %12 = vector.broadcast %10 : vector<64x1xf32> to vector<64x128xf32>
    %13 = vector.broadcast %11 : vector<1x128xf32> to vector<64x128xf32>
    %14 = arith.mulf %12, %13 : vector<64x128xf32>
    %15 = arith.addf %9, %14 : vector<64x128xf32>
    %c0_5 = arith.constant 0 : index
    %c0_6 = arith.constant 0 : index
    %16 = vector.load %arg4[%c0_5, %c0_6] : memref<64x64xbf16, #tpu.memory_space<vmem>>, vector<64x64xbf16>
    %cst = arith.constant 0.000000e+00 : f32
    %17 = vector.broadcast %cst : f32 to vector<64x128xf32>
    %18 = arith.cmpf ogt, %15, %17 : vector<64x128xf32>
    %cst_7 = arith.constant 0.00999999977 : f32
    %19 = vector.broadcast %cst_7 : f32 to vector<64x128xf32>
    %20 = arith.mulf %19, %15 : vector<64x128xf32>
    %21 = arith.select %18, %15, %20 : vector<64x128xi1>, vector<64x128xf32>
    %22 = arith.truncf %21 : vector<64x128xf32> to vector<64x128xbf16>
    %c0_8 = arith.constant 0 : index
    %c0_9 = arith.constant 0 : index
    %23 = vector.load %arg6[%c0_8, %c0_9] : memref<64x64xbf16, #tpu.memory_space<vmem>>, vector<64x64xbf16>
    %cst_10 = arith.constant dense<0.000000e+00> : vector<64x128xf32>
    %24 = tpu.matmul %16, %22, %cst_10 {dimension_numbers = #tpu.dot_dimension_numbers<[1], [0], [0], [1], [0, 0, 1, 1], [], []>} : vector<64x64xbf16>, vector<64x128xbf16>, vector<64x128xf32> -> vector<64x128xf32>
    %c0_11 = arith.constant 0 : index
    %c0_12 = arith.constant 0 : index
    %25 = vector.load %arg5[%c0_11, %c0_12] : memref<64x1xf32, #tpu.memory_space<vmem>>, vector<64x1xf32>
    %26 = vector.broadcast %25 : vector<64x1xf32> to vector<64x128xf32>
    %27 = arith.addf %24, %26 : vector<64x128xf32>
    %cst_13 = arith.constant 0.000000e+00 : f32
    %28 = vector.broadcast %cst_13 : f32 to vector<64x128xf32>
    %29 = arith.cmpf ogt, %27, %28 : vector<64x128xf32>
    %cst_14 = arith.constant 0.00999999977 : f32
    %30 = vector.broadcast %cst_14 : f32 to vector<64x128xf32>
    %31 = arith.mulf %30, %27 : vector<64x128xf32>
    %32 = arith.select %29, %27, %31 : vector<64x128xi1>, vector<64x128xf32>
    %33 = arith.truncf %32 : vector<64x128xf32> to vector<64x128xbf16>
    %cst_15 = arith.constant dense<0.000000e+00> : vector<64x128xf32>
    %34 = tpu.matmul %23, %33, %cst_15 {dimension_numbers = #tpu.dot_dimension_numbers<[1], [0], [0], [1], [0, 0, 1, 1], [], []>} : vector<64x64xbf16>, vector<64x128xbf16>, vector<64x128xf32> -> vector<64x128xf32>
    %c0_16 = arith.constant 0 : index
    %c0_17 = arith.constant 0 : index
    %35 = vector.load %arg7[%c0_16, %c0_17] : memref<64x1xf32, #tpu.memory_space<vmem>>, vector<64x1xf32>
    %36 = vector.broadcast %35 : vector<64x1xf32> to vector<64x128xf32>
    %37 = arith.addf %34, %36 : vector<64x128xf32>
    %cst_18 = arith.constant 0.000000e+00 : f32
    %38 = vector.broadcast %cst_18 : f32 to vector<64x128xf32>
    %39 = arith.cmpf ogt, %37, %38 : vector<64x128xf32>
    %cst_19 = arith.constant 0.00999999977 : f32
    %40 = vector.broadcast %cst_19 : f32 to vector<64x128xf32>
    %41 = arith.mulf %40, %37 : vector<64x128xf32>
    %42 = arith.select %39, %37, %41 : vector<64x128xi1>, vector<64x128xf32>
    %c0_20 = arith.constant 0 : index
    %c0_21 = arith.constant 0 : index
    %43 = vector.load %arg8[%c0_20, %c0_21] : memref<64x1xf32, #tpu.memory_space<vmem>>, vector<64x1xf32>
    %44 = vector.broadcast %43 : vector<64x1xf32> to vector<64x128xf32>
    %45 = arith.mulf %42, %44 : vector<64x128xf32>
    %cst_22 = arith.constant dense<0.000000e+00> : vector<128xf32>
    %46 = vector.multi_reduction <add>, %45, %cst_22 [0] : vector<64x128xf32> to vector<128xf32>
    %47 = vector.shape_cast %46 : vector<128xf32> to vector<1x128xf32>
    %c0_23 = arith.constant 0 : index
    %c0_24 = arith.constant 0 : index
    %48 = vector.load %arg9[%c0_23, %c0_24] : memref<1x1xf32, #tpu.memory_space<vmem>>, vector<1x1xf32>
    %49 = vector.broadcast %48 : vector<1x1xf32> to vector<1x128xf32>
    %50 = arith.addf %47, %49 : vector<1x128xf32>
    %c0_25 = arith.constant 0 : index
    %c0_26 = arith.constant 0 : index
    %51 = vector.load %arg10[%c0_25, %c0_26] : memref<1x128xf32, #tpu.memory_space<vmem>>, vector<1x128xf32>
    tpu.vector_store %arg10[%c0_25, %c0_26], %50 {strides = array<i32>} : memref<1x128xf32, #tpu.memory_space<vmem>>, vector<1x128xf32>,
    return
  }
  func.func @transform_0(%arg0: i32) -> (i32, i32) {
    %c0_i32 = arith.constant 0 : i32
    %c0_i32_0 = arith.constant 0 : i32
    return %c0_i32, %arg0 : i32, i32
  }
  func.func @transform_1(%arg0: i32) -> (i32, i32) {
    %c0_i32 = arith.constant 0 : i32
    %c0_i32_0 = arith.constant 0 : i32
    %c0_i32_1 = arith.constant 0 : i32
    return %c0_i32, %c0_i32_0 : i32, i32
  }
  func.func @transform_2(%arg0: i32) -> (i32, i32) {
    %c0_i32 = arith.constant 0 : i32
    %c0_i32_0 = arith.constant 0 : i32
    %c0_i32_1 = arith.constant 0 : i32
    return %c0_i32, %c0_i32_0 : i32, i32
  }
  func.func @transform_3(%arg0: i32) -> (i32, i32) {
    %c0_i32 = arith.constant 0 : i32
    %c0_i32_0 = arith.constant 0 : i32
    %c0_i32_1 = arith.constant 0 : i32
    return %c0_i32, %c0_i32_0 : i32, i32
  }
  func.func @transform_4(%arg0: i32) -> (i32, i32) {
    %c0_i32 = arith.constant 0 : i32
    %c0_i32_0 = arith.constant 0 : i32
    %c0_i32_1 = arith.constant 0 : i32
    return %c0_i32, %c0_i32_0 : i32, i32
  }
  func.func @transform_5(%arg0: i32) -> (i32, i32) {
    %c0_i32 = arith.constant 0 : i32
    %c0_i32_0 = arith.constant 0 : i32
    %c0_i32_1 = arith.constant 0 : i32
    return %c0_i32, %c0_i32_0 : i32, i32
  }
  func.func @transform_6(%arg0: i32) -> (i32, i32) {
    %c0_i32 = arith.constant 0 : i32
    %c0_i32_0 = arith.constant 0 : i32
    %c0_i32_1 = arith.constant 0 : i32
    return %c0_i32, %c0_i32_0 : i32, i32
  }
  func.func @transform_7(%arg0: i32) -> (i32, i32) {
    %c0_i32 = arith.constant 0 : i32
    %c0_i32_0 = arith.constant 0 : i32
    %c0_i32_1 = arith.constant 0 : i32
    return %c0_i32, %c0_i32_0 : i32, i32
  }
  func.func @transform_8(%arg0: i32) -> (i32, i32) {
    %c0_i32 = arith.constant 0 : i32
    %c0_i32_0 = arith.constant 0 : i32
    %c0_i32_1 = arith.constant 0 : i32
    return %c0_i32, %c0_i32_0 : i32, i32
  }
  func.func @transform_9(%arg0: i32) -> (i32, i32) {
    %c0_i32 = arith.constant 0 : i32
    %c0_i32_0 = arith.constant 0 : i32
    return %c0_i32, %arg0 : i32, i32
  }
}

</mosaic_0001>

<bundles_post_ra>
// kernel: tpu_custom_call.1
= control target key start
LH: loop header
LB: loop body
LE: loop exit
PB: predicated region body
PF: predicated region fallthrough
CT: control target
= control target key end

     0   :  { %s1571_s0 = inlined_call_operand.vmem [shape: f32[2,256], index: 0, kind: input, shape index: {}]   ;;  %s1572_s1 = inlined_call_operand.vmem [shape: f32[64,2], index: 1, kind: input, shape index: {}]   ;;  %s1573_s2 = inlined_call_operand.vmem [shape: f32[64,1], index: 2, kind: input, shape index: {}]   ;;  %s1574_s3 = inlined_call_operand.vmem [shape: bf16[64,64], index: 3, kind: input, shape index: {}]   ;;  %s1575_s4 = inlined_call_operand.vmem [shape: f32[64,1], index: 4, kind: input, shape index: {}]   ;;  %s1576_s5 = inlined_call_operand.vmem [shape: bf16[64,64], index: 5, kind: input, shape index: {}]   ;;  %s1577_s6 = inlined_call_operand.vmem [shape: f32[64,1], index: 6, kind: input, shape index: {}]   ;;  %s1578_s7 = inlined_call_operand.vmem [shape: f32[64,1], index: 7, kind: input, shape index: {}]   ;;  %s1579_s8 = inlined_call_operand.<no memory space> [shape: f32[1,1], index: 8, kind: input, shape index: {}]   ;;  %s1580_s9 = inlined_call_operand.hbm [shape: f32[1,256], index: 9, kind: output, shape index: {}]  }
   0x1   :  { %v14_v0 = vstv %s1579_s8 }
   0x2   :  { %15 = vst [vmem:[#allocation2] sm:$0x1] %v14_v0 }
   0x3   :  { %16 = vsyncpa [#allocation4], 0 }
   0x4   :  { %18 = vsyncpa [#allocation4 + $0x1], 0  ;;  %s1288_s11 = smov 0   ;;  %s1290_s12 = smov 0  }
   0x5   :  { %s1292_s13 = smov 0   ;;  %s1294_s14 = smov 0  }
   0x6 LB: > { %s1309_s8 = sadd.s32 4294967295, %s1230_s14   ;;  %s1035_s15 = sadd.s32 4294967294, %s1230_s14   ;;  %s1230_s14 = sphi %s1294_s14, %s1586_s14   ;;  %s1226_s13 = sphi %s1292_s13, %s1585_s13   ;;  %s1222_s12 = sphi %s1290_s12, %s1584_s12   ;;  %s1218_s11 = sphi %s1288_s11, %s1583_s11  }
   0x7   : > { %s1313_s16 = sadd.s32 1, %s1230_s14   ;;  %s225_s17 = sadd.s32 1, %s1226_s13 }
   0x8   : > { %s222_s18 = ssub.s32 %s1230_s14, %s1313_s16  ;;  %p235_p0 = scmp.ne.s32.totalorder %s1226_s13, %s1222_s12 }
   0x9   : > { %p223_p1 = scmp.eq.s32.totalorder %s222_s18, 0  ;;  %p236_p2 = scmp.eq.s32.totalorder %s1309_s8, 1 }
   0xa   : > { %p241_p3 = scmp.ne.s32.totalorder %s1222_s12, %s1218_s11  ;;  %p242_p4 = scmp.eq.s32.totalorder %s1035_s15, 1 }
   0xb   : > { %s1324_s19 = scalar_select %p223_p1, %s1226_s13, %s225_s17  }
   0xc   : > { %p1326_p5 = por %p236_p2, %p235_p0  ;;  %p1330_p6 = por %p242_p4, %p241_p3 }
   0xd   : > { %p1038_p7 = scmp.ge.s32.totalorder %s1230_s14, 1  ;;  %p291_p8 = scmp.lt.s32.totalorder %s1230_s14, 3 }
   0xf   : > { %p292_p9 = pnand %p1038_p7, %p291_p8 }
  0x10   : > { %v339_v1 = vld [vmem:[%s1573_s2] sm:$0xff] (!%p292_p9)  ;;  %v1232_v3 = vmov (!%p292_p9), 0   ;;  %v340_v4 = vld [vmem:[%s1573_s2 + $0x8] sm:$0xff] (!%p292_p9)  ;;  %v334_v6 = vld [vmem:[%s1572_s1 + $0x18] sm:$0xff] (!%p292_p9)  ;;  %v1233_v7 = vmov (!%p292_p9), 1   ;;  %vm611_vm0 = vcmask (!%p292_p9), 523264   ;;  %v387_v42 = vlaneseq (!%p292_p9) }
  0x11   : > { %295 = sbr.rel (%p292_p9) target bundleno = 724 (0x2d4), region = 56  ;;  %v331_v2 = vld [vmem:[%s1572_s1] sm:$0xff] (!%p292_p9)  ;;  %1149 = vset.pattern.permute.xlu1 (!%p292_p9), %v1232_v3  ;;  %1148 = vset.pattern.permute.xlu0 (!%p292_p9), %v1232_v3  ;;  %v332_v5 = vld [vmem:[%s1572_s1 + $0x8] sm:$0xff] (!%p292_p9)  ;;  %v333_v9 = vld [vmem:[%s1572_s1 + $0x10] sm:$0xff] (!%p292_p9)  ;;  %p325_p10 = scmp.lt.s32.totalorder (!%p292_p9), %s1309_s8, 1 }
  0x12   : > { %401 = vperm.xlu1 (!%p292_p9), %1149, %v339_v1   ;;  %349 = vperm.xlu0 (!%p292_p9), %1148, %v331_v2   ;;  %v336_v8 = vld [vmem:[%s1572_s1 + $0x28] sm:$0xff] (!%p292_p9)  ;;  %v338_v10 = vld [vmem:[%s1572_s1 + $0x38] sm:$0xff] (!%p292_p9)  ;;  %v341_v11 = vld [vmem:[%s1573_s2 + $0x10] sm:$0xff] (!%p292_p9)  ;;  %v1459_v47 = vshrl.u32 (!%p292_p9), %v387_v42, 7  ;;  %s323_s15 = sand.u32 (!%p292_p9), 1, %s1222_s12   ;;  %s1056_s17 = sshll.u32 (!%p292_p9), %s1309_s8, 4 }
  0x13   : > { %v342_v12 = vld [vmem:[%s1573_s2 + $0x18] sm:$0xff] (!%p292_p9)  ;;  %v335_v13 = vld [vmem:[%s1572_s1 + $0x20] sm:$0xff] (!%p292_p9)  ;;  %v337_v14 = vld [vmem:[%s1572_s1 + $0x30] sm:$0xff] (!%p292_p9)  ;;  %s324_s18 = scalar_lea.vmem (!%p292_p9), [#allocation3], %s323_s15  ;;  %s968_s26 = scalar_lea.sflag (!%p292_p9), [#allocation4], %s323_s15 }
  0x14   : > { %v343_v15 = vld [vmem:[%s1573_s2 + $0x20] sm:$0xff] (!%p292_p9)  ;;  %v344_v16 = vld [vmem:[%s1573_s2 + $0x28] sm:$0xff] (!%p292_p9)  ;;  %v345_v17 = vld [vmem:[%s1573_s2 + $0x30] sm:$0xff] (!%p292_p9)  ;;  %v389_v51 = vsub.s32 (!%p292_p9), 0, %v1459_v47  ;;  %v481_v52 = vsub.s32 (!%p292_p9), 1, %v1459_v47  ;;  %s1234_s27 = smov (!%p292_p9), [#allocation3]  }
  0x15   : > { %v346_v18 = vld [vmem:[%s1573_s2 + $0x38] sm:$0xff] (!%p292_p9)  ;;  %v1160_v19 = vld [vmem:[%s1574_s3] sm:$0xff] (!%p292_p9)   ;;  %v544_v21 = vld [vmem:[%s1575_s4 + $0x8] sm:$0xff] (!%p292_p9)  ;;  %s1172_s28 = sshll.u32 (!%p292_p9), %s1234_s27, 4  ;;  %s1173_s28 = int_to_ptr.vmem [resolvable:$false] %s1172_s28 }
  0x16   : > { %406 = vperm.xlu1 (!%p292_p9), %1149, %v340_v4   ;;  %354 = vperm.xlu0 (!%p292_p9), %1148, %v332_v5   ;;  %v543_v20 = vld [vmem:[%s1575_s4] sm:$0xff] (!%p292_p9)  ;;  %v545_v22 = vld [vmem:[%s1575_s4 + $0x10] sm:$0xff] (!%p292_p9)  ;;  %v546_v24 = vld [vmem:[%s1575_s4 + $0x18] sm:$0xff] (!%p292_p9)  ;;  %s1174_s29 = scalar_lea.vmem (!%p292_p9), %s1173_s28, 32 }
  0x17   : > { %1083 = vmatprep.mubr.msk.bf16.mxu0 (!%p292_p9), %vm611_vm0, %v1160_v19  ;;  %v547_v23 = vld [vmem:[%s1575_s4 + $0x20] sm:$0xff] (!%p292_p9)  ;;  %v549_v25 = vld [vmem:[%s1575_s4 + $0x30] sm:$0xff] (!%p292_p9)  ;;  %v548_v26 = vld [vmem:[%s1575_s4 + $0x28] sm:$0xff] (!%p292_p9) }
  0x18   : > { %v717_v27 = vld [vmem:[%s1577_s6] sm:$0xff]  ;;  %v550_v28 = vld [vmem:[%s1575_s4 + $0x38] sm:$0xff]  ;;  %v719_v29 = vld [vmem:[%s1577_s6 + $0x10] sm:$0xff]  ;;  %s326_s22 = scalar_select %p325_p10, %s1309_s8, 1 }
  0x19   : > { %v718_v30 = vld [vmem:[%s1577_s6 + $0x8] sm:$0xff]  ;;  %v886_v31 = vld [vmem:[%s1578_s7] sm:$0xff]  ;;  %v720_v32 = vld [vmem:[%s1577_s6 + $0x18] sm:$0xff] }
  0x1a   : > { %1150 = vset.pattern.permute.xlu1 %v1233_v7  ;;  %364 = vperm.xlu0 %1148, %v334_v6   ;;  %v721_v33 = vld [vmem:[%s1577_s6 + $0x20] sm:$0xff]  ;;  %v887_v34 = vld [vmem:[%s1578_s7 + $0x8] sm:$0xff]  ;;  %v888_v36 = vld [vmem:[%s1578_s7 + $0x10] sm:$0xff]  ;;  %s1039_s25 = sshll.u32 %s326_s22, 1  ;;  %s980_s22 = sshll.u32 %s324_s18, 4  ;;  %s1531_s22 = int_to_ptr.vmem [resolvable:$true] %s980_s22 }
  0x1b   : > { %452 = vperm.xlu1 %1150, %v332_v5   ;;  %v722_v35 = vld [vmem:[%s1577_s6 + $0x28] sm:$0xff]  ;;  %v723_v37 = vld [vmem:[%s1577_s6 + $0x30] sm:$0xff]  ;;  %v889_v38 = vld [vmem:[%s1578_s7 + $0x18] sm:$0xff]  ;;  %s328_s30 = scalar_lea.vmem %s1571_s0, %s1039_s25  ;;  %s1529_s25 = scalar_lea.hbm %s1580_s9, %s1056_s17 }
  0x1c   : > { %v724_v39 = vld [vmem:[%s1577_s6 + $0x38] sm:$0xff]  ;;  %v890_v40 = vld [vmem:[%s1578_s7 + $0x20] sm:$0xff]  ;;  %v892_v41 = vld [vmem:[%s1578_s7 + $0x30] sm:$0xff]  ;;  %s1168_s8 = scalar_lea.vmem %s1531_s22, 16  ;;  %p1175_p0 = scmp.lt.s32.totalorder %s1531_s22, %s1173_s28 }
  0x1d   : > { %v891_v43 = vld [vmem:[%s1578_s7 + $0x28] sm:$0xff]  ;;  %v955_v46 = vld [vmem:[#allocation2] sm:$0x1]  ;;  %v893_v48 = vld [vmem:[%s1578_s7 + $0x38] sm:$0xff]  ;;  %p1169_p11 = scmp.ne.s32.totalorder %s1531_s22, %s1168_s8  ;;  %p1176_p1 = scmp.lt.s32.totalorder %s1174_s29, %s1168_s8 }
  0x1e   : > { %374 = vperm.xlu0 %1148, %v336_v8   ;;  %v330_v53 = vld [vmem:[%s328_s30] sm:$0x3] }
  0x1f   : > { %1151 = vset.pattern.permute.xlu1 %v1232_v3  ;;  %v1471_v56 = vrot.slane %v330_v53, %v389_v51  ;;  %v1473_v57 = vrot.slane %v330_v53, %v481_v52  ;;  %p1170_p12 = pnand %p1169_p11, %p1326_p5  ;;  %p1177_p2 = por %p1176_p1, %p1175_p0 }
  0x20   : > { %359 = vperm.xlu1 %1151, %v333_v9  }
  0x21   : > { %p1171_p13 = pneg %p1170_p12 }
  0x22   : > { %384 = vperm.xlu0 %1148, %v338_v10  }
  0x23   : > { %p1178_p3 = pnand %p1177_p2, %p1171_p13 }
  0x24   : > { %411 = vperm.xlu1 %1151, %v341_v11  }
  0x26   : > { %1156 = vset.pattern.permute.xlu0 %v1233_v7 }
  0x27   : > { %448 = vperm.xlu0 %1156, %v331_v2  }
  0x28   : > { %416 = vperm.xlu1 %1151, %v342_v12  }
  0x2b   : > { %456 = vperm.xlu0 %1156, %v333_v9  }
  0x2c   : > { %1152 = vset.pattern.permute.xlu1 %v1233_v7 }
  0x2d   : > { %460 = vperm.xlu1 %1152, %v334_v6  }
  0x2f   : > { %464 = vperm.xlu0 %1156, %v335_v13  }
  0x31   : > { %1153 = vset.pattern.permute.xlu1 %v1232_v3 }
  0x32   : > { %369 = vperm.xlu1 %1153, %v335_v13  }
  0x33   : > { %472 = vperm.xlu0 %1156, %v337_v14  }
  0x36   : > { %421 = vperm.xlu1 %1153, %v343_v15  }
  0x37   : > { %1159 = vset.pattern.permute.xlu0 %v1232_v3 }
  0x38   : > { %558 = vperm.xlu0 %1159, %v544_v21  }
  0x3a   : > { %426 = vperm.xlu1 %1153, %v344_v16  }
  0x3c   : > { %573 = vperm.xlu0 %1159, %v547_v23  }
  0x3e   : > { %1154 = vset.pattern.permute.xlu1 %v1233_v7 }
  0x3f   : > { %468 = vperm.xlu1 %1154, %v336_v8  }
  0x40   : > { %583 = vperm.xlu0 %1159, %v549_v25  }
  0x43   : > { %1155 = vset.pattern.permute.xlu1 %v1232_v3 }
  0x44   : > { %379 = vperm.xlu1 %1155, %v337_v14   ;;  %727 = vperm.xlu0 %1159, %v717_v27  }
  0x48   : > { %431 = vperm.xlu1 %1155, %v345_v17   ;;  %737 = vperm.xlu0 %1159, %v719_v29  }
  0x4c   : > { %436 = vperm.xlu1 %1155, %v346_v18   ;;  %896 = vperm.xlu0 %1159, %v886_v31  }
  0x50   : > { %1157 = vset.pattern.permute.xlu1 %v1233_v7  ;;  %747 = vperm.xlu0 %1159, %v721_v33  }
  0x51   : > { %476 = vperm.xlu1 %1157, %v338_v10  }
  0x54   : > { %752 = vperm.xlu0 %1159, %v722_v35  }
  0x55   : > { %1158 = vset.pattern.permute.xlu1 %v1232_v3 }
  0x56   : > { %553 = vperm.xlu1 %1158, %v543_v20  }
  0x58   : > { %757 = vperm.xlu0 %1159, %v723_v37  }
  0x5a   : > { %563 = vperm.xlu1 %1158, %v545_v22  }
  0x5c   : > { %762 = vperm.xlu0 %1159, %v724_v39  }
  0x5e   : > { %568 = vperm.xlu1 %1158, %v546_v24  }
  0x60   : > { %926 = vperm.xlu0 %1159, %v892_v41  }
  0x62   : > { %578 = vperm.xlu1 %1158, %v548_v26  }
  0x64   : > { %958 = vperm.xlu0 %1159, %v955_v46  }
  0x66   : > { %588 = vperm.xlu1 %1158, %v550_v28  }
  0x6a   : > { %732 = vperm.xlu1 %1158, %v718_v30  }
  0x6e   : > { %742 = vperm.xlu1 %1158, %v720_v32  }
  0x72   : > { %901 = vperm.xlu1 %1158, %v887_v34  }
  0x76   : > { %906 = vperm.xlu1 %1158, %v888_v36  }
  0x7a   : > { %911 = vperm.xlu1 %1158, %v889_v38  }
  0x7e   : > { %916 = vperm.xlu1 %1158, %v890_v40  }
  0x82   : > { %921 = vperm.xlu1 %1158, %v891_v43  }
  0x86   : > { %931 = vperm.xlu1 %1158, %v893_v48  }
  0x91   : > { %v402_v44 = vpop.permute.xlu1 %401  ;;  %v350_v45 = vpop.permute.xlu0 %349 }
  0x92   : > { %v391_v0 = vmul.f32 %v1471_v56, %v350_v45 }
  0x94   : > { %v439_v4 = vadd.f32 %v402_v44, %v391_v0 }
  0x95   : > { %v407_v49 = vpop.permute.xlu1 %406  ;;  %v355_v50 = vpop.permute.xlu0 %354 }
  0x96   : > { %v392_v59 = vmul.f32 %v1471_v56, %v355_v50 }
  0x98   : > { %v440_v63 = vadd.f32 %v407_v49, %v392_v59 }
  0x99   : > { %v365_v54 = vpop.permute.xlu0 %364 }
  0x9a   : > { %v453_v55 = vpop.permute.xlu1 %452  ;;  %v394_v8 = vmul.f32 %v1471_v56, %v365_v54 }
  0x9b   : > { %v484_v61 = vmul.f32 %v1473_v57, %v453_v55 }
  0x9d   : > { %v375_v58 = vpop.permute.xlu0 %374  ;;  %v492_v2 = vadd.f32 %v484_v61, %v440_v63 }
  0x9e   : > { %v396_v35 = vmul.f32 %v1471_v56, %v375_v58 }
  0x9f   : > { %v360_v60 = vpop.permute.xlu1 %359  ;;  %v516_v7 = vmul.f32 0.01, %v492_v2  ;;  %vm508_vm1 = vcmp.gt.f32.partialorder %v492_v2, 0.0 }
  0xa0   : > { %v393_v9 = vmul.f32 %v1471_v56, %v360_v60 }
  0xa1   : > { %v1477_v62 = vpop.permute.xlu0 %384  ;;  %v524_v16 = vsel %vm508_vm1, %v492_v2, %v516_v7 }
  0xa2   : > { %v398_v55 = vmul.f32 %v1471_v56, %v1477_v62  ;;  %v1164_v62 = vld [vmem:[%s1576_s5] sm:$0xff]  }
  0xa3   : > { %v412_v1 = vpop.permute.xlu1 %411  ;;  %1099 = vmatprep.mubr.msk.bf16.mxu1 %vm611_vm0, %v1164_v62 }
  0xa4   : > { %v441_v12 = vadd.f32 %v412_v1, %v393_v9 }
  0xa6   : > { %v449_v3 = vpop.permute.xlu0 %448 }
  0xa7   : > { %v483_v5 = vmul.f32 %v1473_v57, %v449_v3  ;;  %v417_v6 = vpop.permute.xlu1 %416 }
  0xa8   : > { %v442_v17 = vadd.f32 %v417_v6, %v394_v8 }
  0xa9   : > { %v491_v10 = vadd.f32 %v483_v5, %v439_v4  ;;  %v1161_v5 = vld [vmem:[%s1574_s3 + $0x8] sm:$0xff]  }
  0xaa   : > { %v457_v11 = vpop.permute.xlu0 %456 }
  0xab   : > { %v485_v13 = vmul.f32 %v1473_v57, %v457_v11  ;;  %vm507_vm2 = vcmp.gt.f32.partialorder %v491_v10, 0.0  ;;  %v515_v14 = vmul.f32 0.01, %v491_v10 }
  0xac   : > { %v461_v15 = vpop.permute.xlu1 %460 }
  0xad   : > { %v493_v18 = vadd.f32 %v485_v13, %v441_v12  ;;  %v486_v19 = vmul.f32 %v1473_v57, %v461_v15  ;;  %v523_v20 = vsel %vm507_vm2, %v491_v10, %v515_v14 }
  0xae   : > { %v531_v21 = vpack.c.bf16 %v524_v16, %v523_v20  ;;  %v465_v30 = vpop.permute.xlu0 %464 }
  0xaf   : > { %v517_v22 = vmul.f32 0.01, %v493_v18  ;;  %v494_v23 = vadd.f32 %v486_v19, %v442_v17  ;;  %vm509_vm3 = vcmp.gt.f32.partialorder %v493_v18, 0.0  ;;  %v487_v33 = vmul.f32 %v1473_v57, %v465_v30 }
  0xb0   : > { %1075 = vmatprep.subr.bf16.mxu0 %v531_v21 }
  0xb1   : > { %vm510_vm4 = vcmp.gt.f32.partialorder %v494_v23, 0.0  ;;  %v518_v24 = vmul.f32 0.01, %v494_v23  ;;  %v370_v25 = vpop.permute.xlu1 %369  ;;  %1076 = vmatpush3.bf16.msra.mxu0 %v531_v21  ;;  %v525_v26 = vsel %vm509_vm3, %v493_v18, %v517_v22 }
  0xb2   : > { %v395_v31 = vmul.f32 %v1471_v56, %v370_v25  ;;  %v473_v50 = vpop.permute.xlu0 %472 }
  0xb3   : > { %v526_v27 = vsel %vm510_vm4, %v494_v23, %v518_v24  ;;  %v489_v54 = vmul.f32 %v1473_v57, %v473_v50 }
  0xb4   : > { %v532_v28 = vpack.c.bf16 %v526_v27, %v525_v26 }
  0xb5   : > { %v422_v29 = vpop.permute.xlu1 %421 }
  0xb6   : > { %1077 = vmatprep.subr.bf16.mxu0 %v532_v28  ;;  %v443_v32 = vadd.f32 %v422_v29, %v395_v31 }
  0xb7   : > { %1078 = vmatpush3.bf16.msra.mxu0 %v532_v28  ;;  %v559_v8 = vpop.permute.xlu0 %558 }
  0xb8   : > { %v495_v36 = vadd.f32 %v487_v33, %v443_v32 }
  0xb9   : > { %v427_v34 = vpop.permute.xlu1 %426 }
  0xba   : > { %v444_v38 = vadd.f32 %v427_v34, %v396_v35  ;;  %v519_v40 = vmul.f32 0.01, %v495_v36  ;;  %vm511_vm5 = vcmp.gt.f32.partialorder %v495_v36, 0.0 }
  0xbb   : > { %v574_v13 = vpop.permute.xlu0 %573 }
  0xbc   : > { %v527_v44 = vsel %vm511_vm5, %v495_v36, %v519_v40 }
  0xbe   : > { %v469_v37 = vpop.permute.xlu1 %468 }
  0xbf   : > { %v488_v39 = vmul.f32 %v1473_v57, %v469_v37  ;;  %v584_v26 = vpop.permute.xlu0 %583 }
  0xc1   : > { %v496_v41 = vadd.f32 %v488_v39, %v444_v38 }
  0xc3   : > { %vm512_vm6 = vcmp.gt.f32.partialorder %v496_v41, 0.0  ;;  %v520_v42 = vmul.f32 0.01, %v496_v41  ;;  %v380_v43 = vpop.permute.xlu1 %379 }
  0xc4   : > { %v397_v49 = vmul.f32 %v1471_v56, %v380_v43  ;;  %v1162_v56 = vld [vmem:[%s1574_s3 + $0x10] sm:$0xff]  }
  0xc5   : > { %v528_v45 = vsel %vm512_vm6, %v496_v41, %v520_v42 }
  0xc6   : > { %v533_v46 = vpack.c.bf16 %v528_v45, %v527_v44 }
  0xc7   : > { %v432_v48 = vpop.permute.xlu1 %431 }
  0xc8   : > { %1079 = vmatprep.subr.bf16.mxu0 %v533_v46  ;;  %v445_v52 = vadd.f32 %v432_v48, %v397_v49 }
  0xc9   : > { %1080 = vmatpush3.bf16.msra.mxu0 %v533_v46 }
  0xca   : > { %v497_v58 = vadd.f32 %v489_v54, %v445_v52  ;;  %v1165_v52 = vld [vmem:[%s1576_s5 + $0x8] sm:$0xff]   ;;  %v1167_v54 = vld [vmem:[%s1576_s5 + $0x18] sm:$0xff]  }
  0xcb   : > { %v437_v53 = vpop.permute.xlu1 %436 }
  0xcc   : > { %v446_v60 = vadd.f32 %v437_v53, %v398_v55  ;;  %v521_v63 = vmul.f32 0.01, %v497_v58  ;;  %vm513_vm7 = vcmp.gt.f32.partialorder %v497_v58, 0.0  ;;  %v1166_v53 = vld [vmem:[%s1576_s5 + $0x10] sm:$0xff]   ;;  %v728_v55 = vpop.permute.xlu0 %727 }
  0xce   : > { %v529_v2 = vsel %vm513_vm7, %v497_v58, %v521_v63 }
  0xd0   : > { %v477_v59 = vpop.permute.xlu1 %476 }
  0xd1   : > { %v490_v61 = vmul.f32 %v1473_v57, %v477_v59  ;;  %v1163_v57 = vld [vmem:[%s1574_s3 + $0x18] sm:$0xff]   ;;  %v738_v59 = vpop.permute.xlu0 %737 }
  0xd3   : > { %v498_v0 = vadd.f32 %v490_v61, %v446_v60 }
  0xd5   : > { %vm514_vm8 = vcmp.gt.f32.partialorder %v498_v0, 0.0  ;;  %v522_v1 = vmul.f32 0.01, %v498_v0  ;;  %v554_v6 = vpop.permute.xlu1 %553  ;;  %v897_v61 = vpop.permute.xlu0 %896 }
  0xd7   : > { %v530_v3 = vsel %vm514_vm8, %v498_v0, %v522_v1 }
  0xd8   : > { %v534_v4 = vpack.c.bf16 %v530_v3, %v529_v2 }
  0xd9   : > { %v564_v7 = vpop.permute.xlu1 %563  ;;  %v748_v0 = vpop.permute.xlu0 %747 }
  0xda   : > { %1081 = vmatprep.subr.bf16.mxu0 %v534_v4 }
  0xdb   : > { %1082 = vmatpush3.bf16.msra.mxu0 %v534_v4 }
  0xdd   : > { %v569_v9 = vpop.permute.xlu1 %568  ;;  %v753_v2 = vpop.permute.xlu0 %752 }
  0xde   : > { %1084 = vmatmul.mubr.msk.bf16.vlgmr.msra.gmra.mrb[0].mxu0 %vm611_vm0, %v1161_v5 }
  0xdf   : > { %1087 = vmatprep.mubr.msk.bf16.mxu0 %vm611_vm0, %v1162_v56 }
  0xe1   : > { %v579_v19 = vpop.permute.xlu1 %578 }
  0xe5   : > { %v589_v34 = vpop.permute.xlu1 %588 }
  0xe6   : > { %1088 = vmatmul.mubr.msk.bf16.gmra.mrb[4].mxu0 %vm611_vm0, %v1163_v57 }
  0xe9   : > { %v733_v58 = vpop.permute.xlu1 %732 }
  0xed   : > { %v743_v60 = vpop.permute.xlu1 %742 }
  0xf1   : > { %v902_v63 = vpop.permute.xlu1 %901 }
  0xf5   : > { %v907_v1 = vpop.permute.xlu1 %906 }
  0xf9   : > { %v912_v56 = vpop.permute.xlu1 %911 }
 0x1b1   : > { %v1085_v10 = vpop.f32.mrb[0].mxu0 }
 0x1b2   : > { %v667_v11 = vadd.f32 %v1085_v10, %v564_v7  ;;  %v658_v12 = vpop.f32.mrb[1].mxu0 }
 0x1b3   : > { %v659_v14 = vadd.f32 %v658_v12, %v554_v6  ;;  %v1086_v15 = vpop.f32.mrb[2].mxu0 }
 0x1b4   : > { %v699_v16 = vmul.f32 0.01, %v667_v11  ;;  %v670_v17 = vadd.f32 %v1086_v15, %v569_v9  ;;  %v661_v18 = vpop.f32.mrb[3].mxu0  ;;  %vm691_vm9 = vcmp.gt.f32.partialorder %v667_v11, 0.0  ;;  %v917_v15 = vpop.permute.xlu1 %916 }
 0x1b5   : > { %v697_v20 = vmul.f32 0.01, %v659_v14  ;;  %v662_v21 = vadd.f32 %v661_v18, %v559_v8  ;;  %vm689_vm11 = vcmp.gt.f32.partialorder %v659_v14, 0.0  ;;  %v758_v8 = vpop.permute.xlu0 %757 }
 0x1b6   : > { %vm692_vm10 = vcmp.gt.f32.partialorder %v670_v17, 0.0  ;;  %v700_v22 = vmul.f32 0.01, %v670_v17  ;;  %v707_v24 = vsel %vm691_vm9, %v667_v11, %v699_v16 }
 0x1b7   : > { %v698_v23 = vmul.f32 0.01, %v662_v21  ;;  %vm690_vm12 = vcmp.gt.f32.partialorder %v662_v21, 0.0  ;;  %v705_v28 = vsel %vm689_vm11, %v659_v14, %v697_v20 }
 0x1b8   : > { %v708_v25 = vsel %vm692_vm10, %v670_v17, %v700_v22 }
 0x1b9   : > { %v1089_v27 = vpop.f32.mrb[4].mxu0  ;;  %v706_v29 = vsel %vm690_vm12, %v662_v21, %v698_v23  ;;  %v714_v30 = vpack.c.bf16 %v708_v25, %v707_v24  ;;  %v763_v23 = vpop.permute.xlu0 %762 }
 0x1ba   : > { %v683_v31 = vadd.f32 %v1089_v27, %v584_v26  ;;  %v674_v32 = vpop.f32.mrb[5].mxu0  ;;  %v713_v33 = vpack.c.bf16 %v706_v29, %v705_v28 }
 0x1bb   : > { %v675_v35 = vadd.f32 %v674_v32, %v574_v13  ;;  %v1090_v36 = vpop.f32.mrb[6].mxu0 }
 0x1bc   : > { %v703_v37 = vmul.f32 0.01, %v683_v31  ;;  %v686_v38 = vadd.f32 %v1090_v36, %v589_v34  ;;  %v677_v39 = vpop.f32.mrb[7].mxu0  ;;  %1091 = vmatprep.subr.bf16.mxu1 %v713_v33  ;;  %vm695_vm13 = vcmp.gt.f32.partialorder %v683_v31, 0.0  ;;  %v922_v36 = vpop.permute.xlu1 %921 }
 0x1bd   : > { %v701_v40 = vmul.f32 0.01, %v675_v35  ;;  %v678_v41 = vadd.f32 %v677_v39, %v579_v19  ;;  %1092 = vmatpush3.bf16.msra.mxu1 %v713_v33  ;;  %vm693_vm14 = vcmp.gt.f32.partialorder %v675_v35, 0.0 }
 0x1be   : > { %vm696_vm15 = vcmp.gt.f32.partialorder %v686_v38, 0.0  ;;  %v704_v42 = vmul.f32 0.01, %v686_v38  ;;  %1093 = vmatprep.subr.bf16.mxu1 %v714_v30  ;;  %v711_v44 = vsel %vm695_vm13, %v683_v31, %v703_v37 }
 0x1bf   : > { %vm694_vm1 = vcmp.gt.f32.partialorder %v678_v41, 0.0  ;;  %v702_v43 = vmul.f32 0.01, %v678_v41  ;;  %v709_v46 = vsel %vm693_vm14, %v675_v35, %v701_v40 }
 0x1c0   : > { %v712_v45 = vsel %vm696_vm15, %v686_v38, %v704_v42 }
 0x1c1   : > { %1094 = vmatpush3.bf16.msra.mxu1 %v714_v30  ;;  %v710_v48 = vsel %vm694_vm1, %v678_v41, %v702_v43  ;;  %v716_v49 = vpack.c.bf16 %v712_v45, %v711_v44 }
 0x1c2   : > { %v715_v50 = vpack.c.bf16 %v710_v48, %v709_v46  ;;  %v927_v46 = vpop.permute.xlu0 %926 }
 0x1c4   : > { %1095 = vmatprep.subr.bf16.mxu1 %v715_v50 }
 0x1c5   : > { %1096 = vmatpush3.bf16.msra.mxu1 %v715_v50 }
 0x1c6   : > { %1097 = vmatprep.subr.bf16.mxu1 %v716_v49 }
 0x1c9   : > { %1098 = vmatpush3.bf16.msra.mxu1 %v716_v49 }
 0x1cc   : > { %1100 = vmatmul.mubr.msk.bf16.vlgmr.msra.gmra.mrb[0].mxu1 %vm611_vm0, %v1165_v52  ;;  %v932_v52 = vpop.permute.xlu1 %931 }
 0x1cd   : > { %1103 = vmatprep.mubr.msk.bf16.mxu1 %vm611_vm0, %v1166_v53 }
 0x1d4   : > { %1104 = vmatmul.mubr.msk.bf16.gmra.mrb[4].mxu1 %vm611_vm0, %v1167_v54 }
 0x29f   : > { %v1101_v3 = vpop.f32.mrb[0].mxu1 }
 0x2a0   : > { %v840_v4 = vadd.f32 %v1101_v3, %v738_v59  ;;  %v831_v5 = vpop.f32.mrb[1].mxu1 }
 0x2a1   : > { %v832_v57 = vadd.f32 %v831_v5, %v728_v55  ;;  %v1102_v62 = vpop.f32.mrb[2].mxu1 }
 0x2a2   : > { %v843_v6 = vadd.f32 %v1102_v62, %v743_v60  ;;  %v834_v7 = vpop.f32.mrb[3].mxu1  ;;  %v872_v9 = vmul.f32 0.01, %v840_v4  ;;  %vm864_vm2 = vcmp.gt.f32.partialorder %v840_v4, 0.0 }
 0x2a3   : > { %vm862_vm0 = vcmp.gt.f32.partialorder %v832_v57, 0.0  ;;  %v870_v10 = vmul.f32 0.01, %v832_v57  ;;  %v835_v11 = vadd.f32 %v834_v7, %v733_v58 }
 0x2a4   : > { %v873_v13 = vmul.f32 0.01, %v843_v6  ;;  %vm865_vm4 = vcmp.gt.f32.partialorder %v843_v6, 0.0  ;;  %v880_v16 = vsel %vm864_vm2, %v840_v4, %v872_v9 }
 0x2a5   : > { %v878_v12 = vsel %vm862_vm0, %v832_v57, %v870_v10  ;;  %vm863_vm3 = vcmp.gt.f32.partialorder %v835_v11, 0.0  ;;  %v871_v14 = vmul.f32 0.01, %v835_v11  ;;  %v936_v27 = vmul.f32 %v907_v1, %v880_v16 }
 0x2a6   : > { %v934_v19 = vmul.f32 %v897_v61, %v878_v12  ;;  %v881_v24 = vsel %vm865_vm4, %v843_v6, %v873_v13 }
 0x2a7   : > { %v879_v17 = vsel %vm863_vm3, %v835_v11, %v871_v14  ;;  %v1105_v18 = vpop.f32.mrb[4].mxu1  ;;  %v937_v34 = vmul.f32 %v912_v56, %v881_v24 }
 0x2a8   : > { %v935_v20 = vmul.f32 %v902_v63, %v879_v17  ;;  %v856_v21 = vadd.f32 %v1105_v18, %v758_v8  ;;  %v847_v22 = vpop.f32.mrb[5].mxu1  ;;  %v959_v63 = vpop.permute.xlu0 %958 }
 0x2a9   : > { %v848_v25 = vadd.f32 %v847_v22, %v748_v0  ;;  %v1106_v26 = vpop.f32.mrb[6].mxu1  ;;  %v964_v1 = vrot.slane %v959_v63, %v389_v51 }
 0x2aa   : > { %v942_v28 = vadd.f32 %v935_v20, %v934_v19  ;;  %v859_v29 = vadd.f32 %v1106_v26, %v763_v23  ;;  %v850_v30 = vpop.f32.mrb[7].mxu1  ;;  %v876_v31 = vmul.f32 0.01, %v856_v21  ;;  %vm868_vm6 = vcmp.gt.f32.partialorder %v856_v21, 0.0 }
 0x2ab   : > { %vm866_vm5 = vcmp.gt.f32.partialorder %v848_v25, 0.0  ;;  %v874_v32 = vmul.f32 0.01, %v848_v25  ;;  %v851_v33 = vadd.f32 %v850_v30, %v753_v2 }
 0x2ac   : > { %v943_v35 = vadd.f32 %v942_v28, %v936_v27  ;;  %v877_v38 = vmul.f32 0.01, %v859_v29  ;;  %vm869_vm8 = vcmp.gt.f32.partialorder %v859_v29, 0.0  ;;  %v884_v42 = vsel %vm868_vm6, %v856_v21, %v876_v31 }
 0x2ad   : > { %v882_v37 = vsel %vm866_vm5, %v848_v25, %v874_v32  ;;  %vm867_vm7 = vcmp.gt.f32.partialorder %v851_v33, 0.0  ;;  %v875_v39 = vmul.f32 0.01, %v851_v33  ;;  %v940_v49 = vmul.f32 %v927_v46, %v884_v42 }
 0x2ae   : > { %v938_v40 = vmul.f32 %v917_v15, %v882_v37  ;;  %v944_v41 = vadd.f32 %v943_v35, %v937_v34  ;;  %v885_v48 = vsel %vm869_vm8, %v859_v29, %v877_v38 }
 0x2af   : > { %v883_v43 = vsel %vm867_vm7, %v851_v33, %v875_v39  ;;  %v941_v53 = vmul.f32 %v932_v52, %v885_v48 }
 0x2b0   : > { %v945_v44 = vadd.f32 %v944_v41, %v938_v40  ;;  %v939_v45 = vmul.f32 %v922_v36, %v883_v43 }
 0x2b2   : > { %v946_v50 = vadd.f32 %v945_v44, %v939_v45 }
 0x2b4   : > { %v947_v54 = vadd.f32 %v946_v50, %v940_v49 }
 0x2b6   : > { %v948_v55 = vadd.f32 %v947_v54, %v941_v53 }
 0x2b8   : > { %v949_v58 = vrot.slane %v948_v55, 4 }
 0x2ba   : > { %v950_v59 = vadd.f32 %v949_v58, %v948_v55 }
 0x2bc   : > { %v951_v60 = vrot.slane %v950_v59, 2 }
 0x2be   : > { %v952_v61 = vadd.f32 %v951_v60, %v950_v59 }
 0x2c0   : > { %v953_v0 = vrot.slane %v952_v61, 1 }
 0x2c2   : > { %v954_v2 = vadd.f32 %v953_v0, %v952_v61 }
 0x2c4   : > { %v965_v3 = vadd.f32 %v964_v1, %v954_v2 }
 0x2c6   : > { %966 = vst [vmem:[%s324_s18] sm:$0x1] %v965_v3 }
 0x2c7   : > { %1181 = shalt.err (!%p1178_p3)
}
 0x2c8   : > { %s1182_s30 = scalar_lea.hbm %s1529_s25, 16  ;;  %s1186_s17 = scalar_lea.hbm %s1580_s9, 32 }
 0x2c9   : > { %p1183_p4 = scmp.ne.s32.totalorder %s1529_s25, %s1182_s30  ;;  %p1187_p9 = scmp.lt.u32.totalorder %s1529_s25, %s1580_s9 }
 0x2ca   : > { %p1188_p10 = scmp.lt.u32.totalorder %s1186_s17, %s1182_s30  ;;  %p1190_p12 = scmp.lt.u32.totalorder %s1182_s30, %s1529_s25 }
 0x2cb   : > { %p1184_p7 = pnand %p1183_p4, %p1326_p5 }
 0x2cc   : > { %p1189_p11 = por %p1188_p10, %p1187_p9 }
 0x2cd   : > { %p1185_p8 = pneg %p1184_p7 }
 0x2ce   : > { %p1191_p13 = por %p1190_p12, %p1189_p11 }
 0x2d0   : > { %p1192_p0 = pnand %p1191_p13, %p1185_p8 }
 0x2d2   : > { %1195 = shalt.err (!%p1192_p0)
}
 0x2d3   : > { %1107 = dma.vmem_to_hbm [thread:$0]  (%p1326_p5), %s1531_s22, 16, %s1529_s25, %s968_s26  }
 0x2d4 PF: > { %p1113_p1 = scmp.ge.s32.totalorder %s1230_s14, 2  ;;  %s992_s24 = sand.u32 1, %s1218_s11  }
 0x2d5   : > { %s993_s8 = scalar_lea.sflag [#allocation4], %s992_s24 }
 0x2d6   : > { %p1110_p2 = pnand %p1113_p1, %p1330_p6 }
 0x2d8   : > { %1213 = dma.done.wait (!%p1110_p2), %s993_s8, 16  }
 0x2d9   : > { %1215 = vsyncadd (!%p1110_p2), %s993_s8, 4294967280  ;;  %p21_p3 = scmp.ge.s32.totalorder %s1313_s16, 4   ;;  %s1583_s11 = smov %s1222_s12 }
 0x2da   : > { %s1584_s12 = smov %s1226_s13  ;;  %s1585_s13 = smov %s1324_s19 }
 0x2db   : > { %s1586_s14 = smov %s1313_s16  ;;  %23 = sbr.rel (!%p21_p3) target bundleno = 6 (0x6), region = 91 }
 0x2e2   :  { %997 = vsyncpa [#allocation4], 1 }
 0x2e3   :  { %999 = vsyncpa [#allocation4 + $0x1], 1 }

</bundles_post_ra>
